<compile_context>
chip_gen: v5e
topology: v5e:2x2
jax: 0.10.0
libtpu: 0.0.40
codegen_flags: <defaults>
</compile_context>

<pallas_src>
import functools

import jax
import jax.numpy as jnp
from jax import lax
from jax.experimental import pallas as pl
from jax.experimental.pallas import tpu as pltpu


# ---------------------------------------------------------------------------
# Kernels
# ---------------------------------------------------------------------------

def _block_kernel(xp_ref, w_ref, b_ref, gamma_ref, beta_ref, *rest,
                  eps, n_groups, H, W, has_scale_shift, residual):
    """Fused Conv3x3 + GroupNorm + [scale/shift] + SiLU + [residual].

    xp_ref : (1, (H+3)*(W+2), C_in)  bf16  zero-padded NHWC input, row-flattened
    w_ref  : (9, C_in, C_out)        bf16  conv taps, k = ky*3 + kx
    b/gamma/beta : (1, C_out)        f32
    rest   : [scale, shift (1,1,C_out) f32]
             [xres (1,(H+3)*(W+2),Cr), resw (Cr,C_out) bf16, resb (1,C_out)] | [xres]
             o_ref (1, H*(W+2), C_out)   (columns >= W of each row: don't-care)
    """
    idx = 0
    if has_scale_shift:
        scale_ref, shift_ref = rest[0], rest[1]
        idx = 2
    if residual == "conv":
        xres_ref, resw_ref, resb_ref = rest[idx], rest[idx + 1], rest[idx + 2]
        idx += 3
    elif residual == "identity":
        xres_ref = rest[idx]
        idx += 1
    o_ref = rest[idx]

    WP = W + 2
    HWP = H * WP
    C_out = o_ref.shape[-1]
    Cg = C_out // n_groups

    # --- 3x3 conv: 9 shifted bf16 matmuls, f32 accumulate (no im2col) ---
    acc = jnp.zeros((HWP, C_out), jnp.float32)
    for k in range(9):
        ky, kx = divmod(k, 3)
        off = ky * WP + kx
        xs = xp_ref[0, off:off + HWP, :]                       # (HWP, C_in) bf16
        acc = acc + jnp.dot(xs, w_ref[k],
                            preferred_element_type=jnp.float32)
    x = acc + b_ref[...]                                       # (HWP, C_out) f32

    # --- GroupNorm: two-pass stats over valid columns (col < W) ---
    col = lax.broadcasted_iota(jnp.int32, (HWP, 1), 0) % WP
    vmask = (col < W).astype(jnp.float32)                      # (HWP, 1)
    n = jnp.float32(H * W * Cg)

    # group-membership masks built in-kernel (no extra input DMAs)
    ch_i = lax.broadcasted_iota(jnp.int32, (C_out, n_groups), 0)
    gp_i = lax.broadcasted_iota(jnp.int32, (C_out, n_groups), 1)
    gmask = (ch_i // Cg == gp_i).astype(jnp.float32)           # (C_out, G)
    gp_j = lax.broadcasted_iota(jnp.int32, (n_groups, C_out), 0)
    ch_j = lax.broadcasted_iota(jnp.int32, (n_groups, C_out), 1)
    gmask_t = (ch_j // Cg == gp_j).astype(jnp.float32)         # (G, C_out)

    s1 = jnp.sum(x * vmask, axis=0, keepdims=True)             # (1, C_out)
    mean_g = jnp.dot(s1, gmask, preferred_element_type=jnp.float32) / n
    mean_c = jnp.dot(mean_g, gmask_t, preferred_element_type=jnp.float32)
    xc = x - mean_c
    s2 = jnp.sum(xc * xc * vmask, axis=0, keepdims=True)       # centered, stable
    var_g = jnp.dot(s2, gmask, preferred_element_type=jnp.float32) / n
    var_c = jnp.dot(var_g, gmask_t, preferred_element_type=jnp.float32)
    xn = xc * lax.rsqrt(var_c + eps)
    xn = xn * gamma_ref[...] + beta_ref[...]

    if has_scale_shift:                                        # static gate
        xn = xn * (scale_ref[0] + 1.0) + shift_ref[0]

    y = xn * jax.nn.sigmoid(xn)                                # SiLU

    # --- fused residual branch (center tap of the padded ORIGINAL input) ---
    if residual == "conv":
        xr = xres_ref[0, WP + 1:WP + 1 + HWP, :]               # == original x
        y = y + jnp.dot(xr, resw_ref[...],
                        preferred_element_type=jnp.float32) + resb_ref[...]
    elif residual == "identity":
        xr = xres_ref[0, WP + 1:WP + 1 + HWP, :].astype(jnp.float32)
        y = y + xr

    o_ref[0] = y.astype(o_ref.dtype)
    # TODO(synk): for large feature maps, tile H*W with scratch-accumulated
    # group statistics and pad C_out to a lane-dense multiple of 128.


def _time_mlp_kernel(t_ref, w_ref, b_ref, o_ref):
    # SiLU -> Linear(time_dim, 2*C_out)
    t = t_ref[...]
    t = t * jax.nn.sigmoid(t)
    o_ref[...] = jnp.dot(t, w_ref[...],
                         preferred_element_type=jnp.float32) + b_ref[...]


# ---------------------------------------------------------------------------
# Wrappers
# ---------------------------------------------------------------------------

def _pad_flatten_nhwc(x_nhwc, H, W):
    # pad 1 row on top, 2 rows on bottom (keeps all 9 tap slices in-bounds),
    # 1 column left/right; flatten (row, col).
    xp = jnp.pad(x_nhwc, ((0, 0), (1, 2), (1, 1), (0, 0)))
    B, C = x_nhwc.shape[0], x_nhwc.shape[-1]
    return xp.reshape(B, (H + 3) * (W + 2), C)


def _conv_w_to_taps(w):
    # (C_out, C_in, 3, 3) -> (9, C_in, C_out), tap index k = ky*3 + kx
    C_out, C_in = w.shape[0], w.shape[1]
    return jnp.transpose(w, (2, 3, 1, 0)).reshape(9, C_in, C_out)


def _run_block(xp_flat, w9, b, gamma, beta, *, H, W, n_groups, eps=1e-6,
               scale=None, shift=None, residual=None, xres=None,
               resw=None, resb=None, out_dtype=jnp.float32):
    B, PP, C_in = xp_flat.shape
    C_out = w9.shape[-1]
    WP = W + 2
    HWP = H * WP
    has_scale_shift = scale is not None

    in_specs = [
        pl.BlockSpec((1, PP, C_in), lambda bi: (bi, 0, 0)),      # padded input
        pl.BlockSpec((9, C_in, C_out), lambda bi: (0, 0, 0)),    # conv taps
        pl.BlockSpec((1, C_out), lambda bi: (0, 0)),             # bias
        pl.BlockSpec((1, C_out), lambda bi: (0, 0)),             # gamma
        pl.BlockSpec((1, C_out), lambda bi: (0, 0)),             # beta
    ]
    args = [xp_flat, w9,
            b.reshape(1, C_out).astype(jnp.float32),
            gamma.reshape(1, C_out).astype(jnp.float32),
            beta.reshape(1, C_out).astype(jnp.float32)]

    if has_scale_shift:
        in_specs += [pl.BlockSpec((1, 1, C_out), lambda bi: (bi, 0, 0)),
                     pl.BlockSpec((1, 1, C_out), lambda bi: (bi, 0, 0))]
        args += [scale.astype(jnp.float32), shift.astype(jnp.float32)]

    if residual == "conv":
        Cr = xres.shape[-1]
        in_specs += [pl.BlockSpec((1, PP, Cr), lambda bi: (bi, 0, 0)),
                     pl.BlockSpec((Cr, C_out), lambda bi: (0, 0)),
                     pl.BlockSpec((1, C_out), lambda bi: (0, 0))]
        args += [xres, resw, resb.reshape(1, C_out).astype(jnp.float32)]
    elif residual == "identity":
        in_specs += [pl.BlockSpec((1, PP, xres.shape[-1]), lambda bi: (bi, 0, 0))]
        args += [xres]

    kernel = functools.partial(_block_kernel, eps=eps, n_groups=n_groups,
                               H=H, W=W, has_scale_shift=has_scale_shift,
                               residual=residual)
    return pl.pallas_call(
        kernel,
        out_shape=jax.ShapeDtypeStruct((B, HWP, C_out), out_dtype),
        grid=(B,),
        in_specs=in_specs,
        out_specs=pl.BlockSpec((1, HWP, C_out), lambda bi: (bi, 0, 0)),
        compiler_params=pltpu.CompilerParams(
            dimension_semantics=("parallel",),
            vmem_limit_bytes=32 * 1024 * 1024),
    )(*args)


def resnet_block_forward(x_nchw, params, time_emb=None, n_groups=8):
    """ResnetBlock forward.  params keys:
       w1,b1,g1,be1 / w2,b2,g2,be2 : block convs + GroupNorm affine
       wm (time_dim, 2*C_out), bm  : time MLP (wm == PyTorch Linear weight.T)
       wr (C_out, C_in, 1, 1), br  : residual 1x1 conv (used iff C_in != C_out)
    """
    B, C_in, H, W = x_nchw.shape
    C_out = params["w1"].shape[0]
    WP = W + 2

    x_nhwc = jnp.transpose(x_nchw, (0, 2, 3, 1)).astype(jnp.float32)
    xp1_flat = _pad_flatten_nhwc(x_nhwc, H, W).astype(jnp.bfloat16)

    # ---- time-embedding MLP -> per-batch (scale, shift) ----
    scale = shift = None
    if time_emb is not None and "wm" in params:
        t2 = pl.pallas_call(
            _time_mlp_kernel,
            out_shape=jax.ShapeDtypeStruct((B, 2 * C_out), jnp.float32),
        )(time_emb.astype(jnp.float32),
          params["wm"].astype(jnp.float32),
          params["bm"].reshape(1, 2 * C_out).astype(jnp.float32))
        scale = t2[:, :C_out].reshape(B, 1, C_out)
        shift = t2[:, C_out:].reshape(B, 1, C_out)

    # ---- block1: conv3x3 + GN + scale/shift + SiLU (bf16 out feeds block2) ----
    h_flat = _run_block(
        xp1_flat, _conv_w_to_taps(params["w1"]).astype(jnp.bfloat16),
        params["b1"], params["g1"], params["be1"],
        H=H, W=W, n_groups=n_groups, scale=scale, shift=shift,
        residual=None, out_dtype=jnp.bfloat16)

    # re-pad block1 output for block2's conv (drop don't-care columns)
    h = h_flat.reshape(B, H, WP, C_out)[:, :, :W, :]
    hp_flat = _pad_flatten_nhwc(h, H, W)                       # bf16

    # ---- block2 + fused residual ----
    if C_in != C_out:
        res_mode = "conv"
        xres = xp1_flat
        resw = jnp.transpose(params["wr"].reshape(C_out, C_in)).astype(jnp.bfloat16)
        resb = params["br"]
    else:
        res_mode = "identity"
        xres = _pad_flatten_nhwc(x_nhwc, H, W)                 # f32 identity path
        resw = resb = None

    out_flat = _run_block(
        hp_flat, _conv_w_to_taps(params["w2"]).astype(jnp.bfloat16),
        params["b2"], params["g2"], params["be2"],
        H=H, W=W, n_groups=n_groups, residual=res_mode,
        xres=xres, resw=resw, resb=resb, out_dtype=jnp.float32)

    out = out_flat.reshape(B, H, WP, C_out)[:, :, :W, :]
    return jnp.transpose(out, (0, 3, 1, 2))                    # NCHW


# ---------------------------------------------------------------------------
# Pure-JAX reference (mirrors the PyTorch module, f32 everywhere)
# ---------------------------------------------------------------------------

def resnet_block_reference(x, params, time_emb=None, n_groups=8):
    def block(xb, w, b, g, be, scale_shift=None):
        y = lax.conv_general_dilated(xb, w, (1, 1), ((1, 1), (1, 1)),
                                     dimension_numbers=('NCHW', 'OIHW', 'NCHW'))
        y = y + b[None, :, None, None]
        Bb, C, Hh, Ww = y.shape
        yg = y.reshape(Bb, n_groups, -1)
        m = yg.mean(-1, keepdims=True)
        v = yg.var(-1, keepdims=True)
        yn = ((yg - m) / jnp.sqrt(v + 1e-6)).reshape(Bb, C, Hh, Ww)
        yn = yn * g[None, :, None, None] + be[None, :, None, None]
        if scale_shift is not None:
            s, sh = scale_shift
            yn = yn * (s + 1.0) + sh
        return yn * jax.nn.sigmoid(yn)

    C_in = x.shape[1]
    C_out = params["w1"].shape[0]
    scale_shift = None
    if time_emb is not None and "wm" in params:
        t = time_emb * jax.nn.sigmoid(time_emb)
        t = t @ params["wm"] + params["bm"]
        s, sh = t[:, :C_out], t[:, C_out:]
        scale_shift = (s[:, :, None, None], sh[:, :, None, None])

    h = block(x, params["w1"], params["b1"], params["g1"], params["be1"], scale_shift)
    h = block(h, params["w2"], params["b2"], params["g2"], params["be2"], None)
    if C_in != C_out:
        res = lax.conv_general_dilated(x, params["wr"], (1, 1), ((0, 0), (0, 0)),
                                       dimension_numbers=('NCHW', 'OIHW', 'NCHW'))
        res = res + params["br"][None, :, None, None]
    else:
        res = x
    return h + res


# ---------------------------------------------------------------------------
# Demo / self-test
# ---------------------------------------------------------------------------

if __name__ == "__main__":
    B, dim_in, dim_out, H, W, n_groups, time_dim = 2, 4, 32, 16, 16, 8, 8

    key = jax.random.PRNGKey(0)
    ks = jax.random.split(key, 14)

    x = jax.random.normal(ks[0], (B, dim_in, H, W), jnp.float32)
    time_emb = jax.random.normal(ks[1], (B, time_dim), jnp.float32)

    params = {
        "w1": 0.1 * jax.random.normal(ks[2], (dim_out, dim_in, 3, 3), jnp.float32),
        "b1": 0.1 * jax.random.normal(ks[3], (dim_out,), jnp.float32),
        "g1": 1.0 + 0.1 * jax.random.normal(ks[4], (dim_out,), jnp.float32),
        "be1": 0.1 * jax.random.normal(ks[5], (dim_out,), jnp.float32),
        "w2": 0.05 * jax.random.normal(ks[6], (dim_out, dim_out, 3, 3), jnp.float32),
        "b2": 0.1 * jax.random.normal(ks[7], (dim_out,), jnp.float32),
        "g2": 1.0 + 0.1 * jax.random.normal(ks[8], (dim_out,), jnp.float32),
        "be2": 0.1 * jax.random.normal(ks[9], (dim_out,), jnp.float32),
        "wm": 0.1 * jax.random.normal(ks[10], (time_dim, 2 * dim_out), jnp.float32),
        "bm": 0.05 * jax.random.normal(ks[11], (2 * dim_out,), jnp.float32),
        "wr": 0.1 * jax.random.normal(ks[12], (dim_out, dim_in, 1, 1), jnp.float32),
        "br": 0.05 * jax.random.normal(ks[13], (dim_out,), jnp.float32),
    }

    out = resnet_block_forward(x, params, time_emb=time_emb, n_groups=n_groups)
    out = jax.block_until_ready(out)

    ref = resnet_block_reference(x, params, time_emb=time_emb, n_groups=n_groups)
    assert out.shape == (B, dim_out, H, W)
    max_err = float(jnp.max(jnp.abs(out - ref)))
    # bf16 MXU operands -> compare against the f32 reference with a bf16-aware tolerance
    assert jnp.allclose(out, ref, atol=5e-2, rtol=5e-2), f"mismatch vs reference (max abs err {max_err})"

    print("KERNEL_OK")
</pallas_src>

<mosaic_0001>
module attributes {stable_mosaic.version = 11 : i64} {
  func.func @_time_mlp_kernel(%arg0: memref<2x8xf32, #tpu.memory_space<vmem>>, %arg1: memref<8x64xf32, #tpu.memory_space<vmem>>, %arg2: memref<1x64xf32, #tpu.memory_space<vmem>>, %arg3: memref<2x64xf32, #tpu.memory_space<vmem>>) attributes {dimension_semantics = [], scalar_prefetch = 0 : i64, scratch_operands = 0 : i64, tpu.core_type = #tpu.core_type<tc>} {
    %c0 = arith.constant 0 : index
    %c0_0 = arith.constant 0 : index
    %0 = vector.load %arg0[%c0, %c0_0] : memref<2x8xf32, #tpu.memory_space<vmem>>, vector<2x8xf32>
    %1 = arith.negf %0 : vector<2x8xf32>
    %2 = math.exp %1 : vector<2x8xf32>
    %cst = arith.constant 1.000000e+00 : f32
    %3 = vector.broadcast %cst : f32 to vector<2x8xf32>
    %4 = arith.addf %3, %2 : vector<2x8xf32>
    %5 = arith.divf %3, %4 : vector<2x8xf32>
    %6 = arith.mulf %0, %5 : vector<2x8xf32>
    %c0_1 = arith.constant 0 : index
    %c0_2 = arith.constant 0 : index
    %7 = vector.load %arg1[%c0_1, %c0_2] : memref<8x64xf32, #tpu.memory_space<vmem>>, vector<8x64xf32>
    %cst_3 = arith.constant dense<0.000000e+00> : vector<2x64xf32>
    %8 = tpu.matmul %6, %7, %cst_3 {dimension_numbers = #tpu.dot_dimension_numbers<[1], [0], [0], [1], [0, 0, 1, 1], [], []>} : vector<2x8xf32>, vector<8x64xf32>, vector<2x64xf32> -> vector<2x64xf32>
    %c0_4 = arith.constant 0 : index
    %c0_5 = arith.constant 0 : index
    %9 = vector.load %arg2[%c0_4, %c0_5] : memref<1x64xf32, #tpu.memory_space<vmem>>, vector<1x64xf32>
    %10 = vector.broadcast %9 : vector<1x64xf32> to vector<2x64xf32>
    %11 = arith.addf %8, %10 : vector<2x64xf32>
    %c0_6 = arith.constant 0 : index
    %c0_7 = arith.constant 0 : index
    %12 = vector.load %arg3[%c0_6, %c0_7] : memref<2x64xf32, #tpu.memory_space<vmem>>, vector<2x64xf32>
    tpu.vector_store %arg3[%c0_6, %c0_7], %11 {strides = array<i32>} : memref<2x64xf32, #tpu.memory_space<vmem>>, vector<2x64xf32>,
    return
  }
}

</mosaic_0001>

<bundles_post_ra>
// kernel: tpu_custom_call.1
= control target key start
LH: loop header
LB: loop body
LE: loop exit
PB: predicated region body
PF: predicated region fallthrough
CT: control target
= control target key end

     0   :  { %8 = vsyncpa [#allocation3], 0  ;;  %s236_s0 = inlined_call_operand.hbm [shape: f32[2,8], index: 0, kind: input, shape index: {}]   ;;  %s237_s1 = inlined_call_operand.hbm [shape: f32[8,64], index: 1, kind: input, shape index: {}]   ;;  %s238_s2 = inlined_call_operand.vmem [shape: f32[1,64], index: 2, kind: input, shape index: {}]   ;;  %s239_s3 = inlined_call_operand.hbm [shape: f32[2,64], index: 3, kind: output, shape index: {}]  }
   0x1   :  { %9 = vsyncpa [#allocation6], 0 }
   0x2   :  { %10 = vsyncpa [#allocation4], 0  ;;  %s16_s14 = sshll.u32 %s236_s0, 4  ;;  %s201_s15 = smov [#allocation2]   ;;  %s17_s14 = int_to_ptr.hbm [resolvable:$true] %s16_s14 }
   0x3   :  { %s18_s16 = sshll.u32 %s201_s15, 4  ;;  %s27_s19 = sshll.u32 %s237_s1, 4  ;;  %s19_s16 = int_to_ptr.vmem [resolvable:$true] %s18_s16  ;;  %s28_s19 = int_to_ptr.hbm [resolvable:$true] %s27_s19 }
   0x4   :  { %21 = dma.hbm_to_vmem [thread:$0]  %s17_s14, 32, %s19_s16, [#allocation3]  }
   0x5   :  { %s202_s20 = smov [#allocation5]  }
   0x6   :  { %s29_s21 = sshll.u32 %s202_s20, 4  ;;  %s30_s21 = int_to_ptr.vmem [resolvable:$true] %s29_s21 }
   0x7   :  { %32 = dma.hbm_to_vmem [thread:$0]  %s28_s19, 128, %s30_s21, [#allocation6]  }
   0x8   :  { %195 = dma.done.wait [#allocation3], 32  }
   0x9   :  { %196 = vsyncadd [#allocation3], 4294967264 }
   0xa   :  { %197 = dma.done.wait [#allocation6], 128  }
   0xb   :  { %198 = vsyncadd [#allocation6], 4294967168  ;;  %v64_v0 = vld [vmem:[#allocation5] sm:$0xff]  ;;  %v43_v1 = vld [vmem:[#allocation2] sm:$0x3]  ;;  %vm69_vm4 = vcmask 64512  }
   0xc   :  { %88 = vmatpush.msra.mxu0 %v64_v0  ;;  %v113_v2 = vmul.f32 -1.442695, %v43_v1  ;;  %v118_v16 = vld [vmem:[%s238_s2] ss:$0 sm:$0xff]  ;;  %s203_s22 = smov [#allocation7]   ;;  %s102_s26 = sshll.u32 %s239_s3, 4  ;;  %s103_s26 = int_to_ptr.hbm [resolvable:$true] %s102_s26 }
   0xd   :  { %s100_s23 = sshll.u32 %s203_s22, 4  ;;  %vm93_vm5 = vcmask 517120   ;;  %s101_s23 = int_to_ptr.vmem [resolvable:$true] %s100_s23 }
   0xe   :  { %119 = vpow2.f32 %v113_v2 }
  0x14   :  { %v120_v3 = vpop.eup %119 }
  0x15   :  { %v47_v4 = vadd.f32 1.0, %v120_v3 }
  0x17   :  { %121 = vrcp.f32 %v47_v4  ;;  %v59_v7 = vand.u32 2147483648, %v47_v4  ;;  %vm53_vm0 = vweird.f32 %v47_v4  ;;  %v57_v9 = vand.u32 2147483647, %v47_v4 }
  0x19   :  { %v60_v11 = vor.u32 1.1754944e-38, %v59_v7  ;;  %vm58_vm3 = vcmp.eq.f32.partialorder %v57_v9, 8.507059e+37 }
  0x1d   :  { %v122_v5 = vpop.eup %121 }
  0x1e   :  { %v49_v6 = vmul.f32 %v122_v5, %v47_v4  ;;  %vm54_vm1 = vweird.f32 %v122_v5 }
  0x1f   :  { %vm55_vm2 = vmor %vm53_vm0, %vm54_vm1 }
  0x20   :  { %v50_v8 = vsub.f32 1.0, %v49_v6 }
  0x22   :  { %v51_v10 = vmul.f32 %v122_v5, %v50_v8 }
  0x24   :  { %v52_v12 = vadd.f32 %v122_v5, %v51_v10 }
  0x26   :  { %v56_v13 = vsel %vm55_vm2, %v122_v5, %v52_v12 }
  0x27   :  { %v61_v14 = vsel %vm58_vm3, %v60_v11, %v56_v13 }
  0x28   :  { %v63_v15 = vmul.f32 %v61_v14, %v43_v1 }
  0x2a   :  { %114 = vmatmul.msk.f32.vlgmr.msra.gmra.mxu0 %vm69_vm4, %v63_v15 }
  0xa7   :  { %v90_v17 = vpop.f32.mrf.mxu0 }
  0xa8   :  { %v91_v18 = vadd.f32 %v118_v16, %v90_v17 }
  0xaa   :  { %94 = vst.msk [vmem:[#allocation7] sm:$0x3] %vm93_vm5, %v91_v18 }
  0xab   :  { %105 = dma.vmem_to_hbm [thread:$0]  %s101_s23, 32, %s103_s26, [#allocation4]  }
  0xac   :  { %199 = dma.done.wait [#allocation4], 32  }
  0xad   :  { %200 = vsyncadd [#allocation4], 4294967264 }
  0xae   :  { %110 = vsyncpa [#allocation3], 1 }
  0xaf   :  { %111 = vsyncpa [#allocation6], 1 }
  0xb0   :  { %112 = vsyncpa [#allocation4], 1 }

</bundles_post_ra>
